<compile_context>
chip_gen: v7x
topology: tpu7x:2x2x1
jax: 0.10.0
libtpu: 0.0.40
codegen_flags: <defaults>
</compile_context>

<pallas_src>
import jax
import jax.numpy as jnp
from jax import lax
from jax.experimental import pallas as pl
from jax.experimental.pallas import tpu as pltpu

EPS = 1e-5


def _silu_f32(y):
    # y * sigmoid(y), with sigmoid expressed via a single tanh so each element
    # issues one EUP push instead of two (exp + reciprocal).
    return y * (0.5 * jnp.tanh(0.5 * y) + 0.5)


def ffn_kernel(x_ref, w1_ref, w2_ref, w3_ref, b1_ref, b2_ref, b3_ref, o_ref):
    """x_ref: (TB, F_in) f32 tile. Weights bf16 resident, biases f32 (1, h_i)."""
    # Cast to bf16 inside the kernel (hidden under DMA/MXU) so x's HBM stream
    # stays a single f32 read with no extra wrapper pass.
    x = x_ref[...].astype(jnp.bfloat16)

    # block 1: (bn0 + dense1 + bn1 folded) -> SiLU -> dropout(identity, eval)
    h = jnp.dot(x, w1_ref[...], preferred_element_type=jnp.float32)
    h = _silu_f32(h + b1_ref[...])

    # block 2: (dense2 + bn2 folded) -> SiLU -> dropout(identity, eval)
    h = jnp.dot(h.astype(jnp.bfloat16), w2_ref[...],
                preferred_element_type=jnp.float32)
    h = _silu_f32(h + b2_ref[...])

    # block 3: (dense3 + bn3 folded) -> SiLU -> dropout(identity, eval)
    h = jnp.dot(h.astype(jnp.bfloat16), w3_ref[...],
                preferred_element_type=jnp.float32)
    h = _silu_f32(h + b3_ref[...])

    o_ref[...] = h.astype(o_ref.dtype)


def prepare_params(params):
    """Fold eval-mode BatchNorms into the Linears and cast weights to bf16.

    Call ONCE at parameter-load time; feature_ffn consumes the result, so the
    per-forward work is exactly one pallas_call over x.
    """
    def unpack(bn):
        gamma, beta, mean, var = bn[0], bn[1], bn[2], bn[3]
        s = gamma * lax.rsqrt(var + EPS)
        return s, beta - mean * s  # BN(y) = y * s + shift

    s0, t0 = unpack(params["bn0"])
    s1, t1 = unpack(params["bn1"])
    s2, t2 = unpack(params["bn2"])
    s3, t3 = unpack(params["bn3"])

    w1, b1 = params["w1"], params["b1"][0]
    w2, b2 = params["w2"], params["b2"][0]
    w3, b3 = params["w3"], params["b3"][0]

    # bn0 folded into the input side of dense1; bn1/bn2/bn3 into the output
    # columns of dense1/dense2/dense3.
    w1f = (s0[:, None] * w1) * s1[None, :]
    b1f = (b1 + t0 @ w1) * s1 + t1
    w2f = w2 * s2[None, :]
    b2f = b2 * s2 + t2
    w3f = w3 * s3[None, :]
    b3f = b3 * s3 + t3

    return {
        "w1": w1f.astype(jnp.bfloat16),
        "w2": w2f.astype(jnp.bfloat16),
        "w3": w3f.astype(jnp.bfloat16),
        "b1": b1f.reshape(1, -1).astype(jnp.float32),
        "b2": b2f.reshape(1, -1).astype(jnp.float32),
        "b3": b3f.reshape(1, -1).astype(jnp.float32),
    }


def feature_ffn(x, folded, *, block_b=512, out_dtype=jnp.float32):
    """x: [B, F_in] float32.  folded: dict from prepare_params()."""
    B, f_in = x.shape
    w1, w2, w3 = folded["w1"], folded["w2"], folded["w3"]
    b1, b2, b3 = folded["b1"], folded["b2"], folded["b3"]
    h1, h2, h3 = w1.shape[1], w2.shape[1], w3.shape[1]

    # Batch tile: as large as allowed (amortizes per-step overhead, better HBM
    # roofline), but keep >= 2 grid steps whenever B can be split 8-aligned so
    # both of v7x's TensorCores get work under dimension_semantics=("parallel",).
    tb = min(block_b, B)
    if tb != B:
        tb = max(8, (tb // 8) * 8)
    if pl.cdiv(B, tb) < 2 and B >= 16:
        tb = (((B + 1) // 2) + 7) // 8 * 8
    grid = (pl.cdiv(B, tb),)

    def resident(shape):
        # Constant index_map + single buffer: the block is DMA'd once and stays
        # resident in VMEM for the whole call (no pointless double-buffering).
        return pl.BlockSpec(shape, lambda i: (0, 0), pipeline_mode=pl.Buffered(1))

    # VMEM budget with headroom, clamped to v7x's 64 MiB physical VMEM.
    out_bytes = jnp.dtype(out_dtype).itemsize
    resident_bytes = 2 * (f_in * h1 + h1 * h2 + h2 * h3) + 4 * (h1 + h2 + h3)
    stream_bytes = 2 * (tb * f_in * 4 + tb * h3 * out_bytes)       # x / out, 2 buffers
    scratch_bytes = 4 * tb * max(h1, h2, h3) * 4                   # f32 activations
    vmem_limit = min(64 * 1024 * 1024,
                     max(32 * 1024 * 1024,
                         2 * (resident_bytes + stream_bytes + scratch_bytes)))

    return pl.pallas_call(
        ffn_kernel,
        out_shape=jax.ShapeDtypeStruct((B, h3), out_dtype),
        grid=grid,
        in_specs=[
            pl.BlockSpec((tb, f_in), lambda i: (i, 0)),   # x streams over the grid
            resident((f_in, h1)),
            resident((h1, h2)),
            resident((h2, h3)),
            resident((1, h1)),
            resident((1, h2)),
            resident((1, h3)),
        ],
        out_specs=pl.BlockSpec((tb, h3), lambda i: (i, 0)),
        compiler_params=pltpu.CompilerParams(
            dimension_semantics=("parallel",),
            vmem_limit_bytes=int(vmem_limit),
        ),
    )(x, w1, w2, w3, b1, b2, b3)


def feature_ffn_reference(x, params):
    """Pure-JAX eval-mode reference (f32) for correctness checking."""
    def bn(y, p):
        gamma, beta, mean, var = p[0], p[1], p[2], p[3]
        return (y - mean) * (gamma * lax.rsqrt(var + EPS)) + beta

    def silu(y):
        return y * jax.nn.sigmoid(y)

    h = bn(x, params["bn0"])
    h = silu(bn(h @ params["w1"] + params["b1"][0], params["bn1"]))
    h = silu(bn(h @ params["w2"] + params["b2"][0], params["bn2"]))
    h = silu(bn(h @ params["w3"] + params["b3"][0], params["bn3"]))
    return h


def init_params(key, in_features, hidden):
    """Deterministic synthetic parameters (shapes follow FeatureFFN.__init__)."""
    h1, h2, h3 = hidden
    keys = jax.random.split(key, 16)

    def bn_pack(kg, kb, km, kv, n):
        gamma = 1.0 + 0.1 * jax.random.normal(kg, (n,), jnp.float32)
        beta = 0.1 * jax.random.normal(kb, (n,), jnp.float32)
        mean = 0.1 * jax.random.normal(km, (n,), jnp.float32)
        var = jax.random.uniform(kv, (n,), jnp.float32, 0.5, 1.5)
        return jnp.stack([gamma, beta, mean, var], axis=0)  # (4, n)

    def lin(kw, kb, n_in, n_out):
        # stored as [in, out] (transpose of torch's nn.Linear weight)
        w = 0.05 * jax.random.normal(kw, (n_in, n_out), jnp.float32)
        b = 0.05 * jax.random.normal(kb, (1, n_out), jnp.float32)
        return w, b

    w1, b1 = lin(keys[0], keys[1], in_features, h1)
    w2, b2 = lin(keys[2], keys[3], h1, h2)
    w3, b3 = lin(keys[4], keys[5], h2, h3)
    return {
        "bn0": bn_pack(keys[6], keys[7], keys[8], keys[9], in_features),
        "w1": w1, "b1": b1, "bn1": bn_pack(keys[10], keys[11], keys[12], keys[13], h1),
        "w2": w2, "b2": b2, "bn2": bn_pack(keys[14], keys[15], keys[6], keys[7], h2),
        "w3": w3, "b3": b3, "bn3": bn_pack(keys[8], keys[9], keys[10], keys[11], h3),
    }


if __name__ == "__main__":
    # Small shapes consistent with the module: 128-wide features / hidden dims,
    # batch = 256 so the grid keeps 2 batch tiles (one per v7x TensorCore).
    B, F_IN = 256, 128
    HIDDEN = [128, 128, 128]

    key = jax.random.PRNGKey(0)
    kx, kp = jax.random.split(key)
    x = jax.random.normal(kx, (B, F_IN), jnp.float32)
    params = init_params(kp, F_IN, HIDDEN)

    # One-time parameter preparation (BN fold + bf16 cast), outside the forward.
    folded = jax.tree_util.tree_map(jax.block_until_ready, prepare_params(params))

    out = feature_ffn(x, folded, block_b=512)
    jax.block_until_ready(out)

    assert out.shape == (B, HIDDEN[-1]) and out.dtype == jnp.float32
    assert bool(jnp.all(jnp.isfinite(out)))

    # Tolerance covers bf16 MXU inputs / bf16 inter-layer activations (intentional)
    # vs the pure f32 reference; the tanh-based sigmoid itself is exact.
    ref = feature_ffn_reference(x, params)
    max_err = float(jnp.max(jnp.abs(out - ref)))
    assert max_err < 5e-2, f"max abs error too large: {max_err}"

    print("KERNEL_OK")
</pallas_src>

<mosaic_0001>
module attributes {stable_mosaic.version = 11 : i64} {
  func.func @ffn_kernel(%arg0: i32, %arg1: memref<128x128xf32, #tpu.memory_space<vmem>>, %arg2: memref<128x128xbf16, #tpu.memory_space<vmem>>, %arg3: memref<128x128xbf16, #tpu.memory_space<vmem>>, %arg4: memref<128x128xbf16, #tpu.memory_space<vmem>>, %arg5: memref<1x128xf32, #tpu.memory_space<vmem>>, %arg6: memref<1x128xf32, #tpu.memory_space<vmem>>, %arg7: memref<1x128xf32, #tpu.memory_space<vmem>>, %arg8: memref<128x128xf32, #tpu.memory_space<vmem>>) attributes {dimension_semantics = [#tpu.dimension_semantics<parallel>], iteration_bounds = array<i64: 2>, scalar_prefetch = 0 : i64, scratch_operands = 0 : i64, tpu.core_type = #tpu.core_type<tc>, window_params = [{transform_indices = @transform_0, window_bounds = array<i64: 128, 128>}, {pipeline_mode = #tpu.pipeline_mode<synchronous>, transform_indices = @transform_1, window_bounds = array<i64: 128, 128>}, {pipeline_mode = #tpu.pipeline_mode<synchronous>, transform_indices = @transform_2, window_bounds = array<i64: 128, 128>}, {pipeline_mode = #tpu.pipeline_mode<synchronous>, transform_indices = @transform_3, window_bounds = array<i64: 128, 128>}, {pipeline_mode = #tpu.pipeline_mode<synchronous>, transform_indices = @transform_4, window_bounds = array<i64: 1, 128>}, {pipeline_mode = #tpu.pipeline_mode<synchronous>, transform_indices = @transform_5, window_bounds = array<i64: 1, 128>}, {pipeline_mode = #tpu.pipeline_mode<synchronous>, transform_indices = @transform_6, window_bounds = array<i64: 1, 128>}, {transform_indices = @transform_7, window_bounds = array<i64: 128, 128>}]} {
    %c0 = arith.constant 0 : index
    %c0_0 = arith.constant 0 : index
    %0 = vector.load %arg1[%c0, %c0_0] : memref<128x128xf32, #tpu.memory_space<vmem>>, vector<128x128xf32>
    %1 = arith.truncf %0 : vector<128x128xf32> to vector<128x128xbf16>
    %c0_1 = arith.constant 0 : index
    %c0_2 = arith.constant 0 : index
    %2 = vector.load %arg2[%c0_1, %c0_2] : memref<128x128xbf16, #tpu.memory_space<vmem>>, vector<128x128xbf16>
    %cst = arith.constant dense<0.000000e+00> : vector<128x128xf32>
    %3 = tpu.matmul %1, %2, %cst {dimension_numbers = #tpu.dot_dimension_numbers<[1], [0], [0], [1], [0, 0, 1, 1], [], []>} : vector<128x128xbf16>, vector<128x128xbf16>, vector<128x128xf32> -> vector<128x128xf32>
    %c0_3 = arith.constant 0 : index
    %c0_4 = arith.constant 0 : index
    %4 = vector.load %arg5[%c0_3, %c0_4] : memref<1x128xf32, #tpu.memory_space<vmem>>, vector<1x128xf32>
    %5 = vector.broadcast %4 : vector<1x128xf32> to vector<128x128xf32>
    %6 = arith.addf %3, %5 : vector<128x128xf32>
    %cst_5 = arith.constant 5.000000e-01 : f32
    %7 = vector.broadcast %cst_5 : f32 to vector<128x128xf32>
    %8 = arith.mulf %7, %6 : vector<128x128xf32>
    %9 = math.tanh %8 : vector<128x128xf32>
    %cst_6 = arith.constant 5.000000e-01 : f32
    %10 = vector.broadcast %cst_6 : f32 to vector<128x128xf32>
    %11 = arith.mulf %10, %9 : vector<128x128xf32>
    %cst_7 = arith.constant 5.000000e-01 : f32
    %12 = vector.broadcast %cst_7 : f32 to vector<128x128xf32>
    %13 = arith.addf %11, %12 : vector<128x128xf32>
    %14 = arith.mulf %6, %13 : vector<128x128xf32>
    %15 = arith.truncf %14 : vector<128x128xf32> to vector<128x128xbf16>
    %c0_8 = arith.constant 0 : index
    %c0_9 = arith.constant 0 : index
    %16 = vector.load %arg3[%c0_8, %c0_9] : memref<128x128xbf16, #tpu.memory_space<vmem>>, vector<128x128xbf16>
    %cst_10 = arith.constant dense<0.000000e+00> : vector<128x128xf32>
    %17 = tpu.matmul %15, %16, %cst_10 {dimension_numbers = #tpu.dot_dimension_numbers<[1], [0], [0], [1], [0, 0, 1, 1], [], []>} : vector<128x128xbf16>, vector<128x128xbf16>, vector<128x128xf32> -> vector<128x128xf32>
    %c0_11 = arith.constant 0 : index
    %c0_12 = arith.constant 0 : index
    %18 = vector.load %arg6[%c0_11, %c0_12] : memref<1x128xf32, #tpu.memory_space<vmem>>, vector<1x128xf32>
    %19 = vector.broadcast %18 : vector<1x128xf32> to vector<128x128xf32>
    %20 = arith.addf %17, %19 : vector<128x128xf32>
    %cst_13 = arith.constant 5.000000e-01 : f32
    %21 = vector.broadcast %cst_13 : f32 to vector<128x128xf32>
    %22 = arith.mulf %21, %20 : vector<128x128xf32>
    %23 = math.tanh %22 : vector<128x128xf32>
    %cst_14 = arith.constant 5.000000e-01 : f32
    %24 = vector.broadcast %cst_14 : f32 to vector<128x128xf32>
    %25 = arith.mulf %24, %23 : vector<128x128xf32>
    %cst_15 = arith.constant 5.000000e-01 : f32
    %26 = vector.broadcast %cst_15 : f32 to vector<128x128xf32>
    %27 = arith.addf %25, %26 : vector<128x128xf32>
    %28 = arith.mulf %20, %27 : vector<128x128xf32>
    %29 = arith.truncf %28 : vector<128x128xf32> to vector<128x128xbf16>
    %c0_16 = arith.constant 0 : index
    %c0_17 = arith.constant 0 : index
    %30 = vector.load %arg4[%c0_16, %c0_17] : memref<128x128xbf16, #tpu.memory_space<vmem>>, vector<128x128xbf16>
    %cst_18 = arith.constant dense<0.000000e+00> : vector<128x128xf32>
    %31 = tpu.matmul %29, %30, %cst_18 {dimension_numbers = #tpu.dot_dimension_numbers<[1], [0], [0], [1], [0, 0, 1, 1], [], []>} : vector<128x128xbf16>, vector<128x128xbf16>, vector<128x128xf32> -> vector<128x128xf32>
    %c0_19 = arith.constant 0 : index
    %c0_20 = arith.constant 0 : index
    %32 = vector.load %arg7[%c0_19, %c0_20] : memref<1x128xf32, #tpu.memory_space<vmem>>, vector<1x128xf32>
    %33 = vector.broadcast %32 : vector<1x128xf32> to vector<128x128xf32>
    %34 = arith.addf %31, %33 : vector<128x128xf32>
    %cst_21 = arith.constant 5.000000e-01 : f32
    %35 = vector.broadcast %cst_21 : f32 to vector<128x128xf32>
    %36 = arith.mulf %35, %34 : vector<128x128xf32>
    %37 = math.tanh %36 : vector<128x128xf32>
    %cst_22 = arith.constant 5.000000e-01 : f32
    %38 = vector.broadcast %cst_22 : f32 to vector<128x128xf32>
    %39 = arith.mulf %38, %37 : vector<128x128xf32>
    %cst_23 = arith.constant 5.000000e-01 : f32
    %40 = vector.broadcast %cst_23 : f32 to vector<128x128xf32>
    %41 = arith.addf %39, %40 : vector<128x128xf32>
    %42 = arith.mulf %34, %41 : vector<128x128xf32>
    %c0_24 = arith.constant 0 : index
    %c0_25 = arith.constant 0 : index
    %43 = vector.load %arg8[%c0_24, %c0_25] : memref<128x128xf32, #tpu.memory_space<vmem>>, vector<128x128xf32>
    tpu.vector_store %arg8[%c0_24, %c0_25], %42 {strides = array<i32>} : memref<128x128xf32, #tpu.memory_space<vmem>>, vector<128x128xf32>,
    return
  }
  func.func @transform_0(%arg0: i32) -> (i32, i32) {
    %c0_i32 = arith.constant 0 : i32
    %c0_i32_0 = arith.constant 0 : i32
    return %arg0, %c0_i32 : i32, i32
  }
  func.func @transform_1(%arg0: i32) -> (i32, i32) {
    %c0_i32 = arith.constant 0 : i32
    %c0_i32_0 = arith.constant 0 : i32
    %c0_i32_1 = arith.constant 0 : i32
    return %c0_i32, %c0_i32_0 : i32, i32
  }
  func.func @transform_2(%arg0: i32) -> (i32, i32) {
    %c0_i32 = arith.constant 0 : i32
    %c0_i32_0 = arith.constant 0 : i32
    %c0_i32_1 = arith.constant 0 : i32
    return %c0_i32, %c0_i32_0 : i32, i32
  }
  func.func @transform_3(%arg0: i32) -> (i32, i32) {
    %c0_i32 = arith.constant 0 : i32
    %c0_i32_0 = arith.constant 0 : i32
    %c0_i32_1 = arith.constant 0 : i32
    return %c0_i32, %c0_i32_0 : i32, i32
  }
  func.func @transform_4(%arg0: i32) -> (i32, i32) {
    %c0_i32 = arith.constant 0 : i32
    %c0_i32_0 = arith.constant 0 : i32
    %c0_i32_1 = arith.constant 0 : i32
    return %c0_i32, %c0_i32_0 : i32, i32
  }
  func.func @transform_5(%arg0: i32) -> (i32, i32) {
    %c0_i32 = arith.constant 0 : i32
    %c0_i32_0 = arith.constant 0 : i32
    %c0_i32_1 = arith.constant 0 : i32
    return %c0_i32, %c0_i32_0 : i32, i32
  }
  func.func @transform_6(%arg0: i32) -> (i32, i32) {
    %c0_i32 = arith.constant 0 : i32
    %c0_i32_0 = arith.constant 0 : i32
    %c0_i32_1 = arith.constant 0 : i32
    return %c0_i32, %c0_i32_0 : i32, i32
  }
  func.func @transform_7(%arg0: i32) -> (i32, i32) {
    %c0_i32 = arith.constant 0 : i32
    %c0_i32_0 = arith.constant 0 : i32
    return %arg0, %c0_i32 : i32, i32
  }
}

</mosaic_0001>

<bundles_post_ra>
// kernel: tpu_custom_call.1
= control target key start
LH: loop header
LB: loop body
LE: loop exit
PB: predicated region body
PF: predicated region fallthrough
CT: control target
= control target key end

     0   :  { %12 = vsyncpa [#allocation3], 0  ;;  %s2395_s0 = inlined_call_operand.hbm [shape: f32[256,128], index: 0, kind: input, shape index: {}]   ;;  %s2396_s1 = inlined_call_operand.hbm [shape: bf16[128,128], index: 1, kind: input, shape index: {}]   ;;  %s2397_s2 = inlined_call_operand.hbm [shape: bf16[128,128], index: 2, kind: input, shape index: {}]   ;;  %s2398_s3 = inlined_call_operand.hbm [shape: bf16[128,128], index: 3, kind: input, shape index: {}]   ;;  %s2399_s4 = inlined_call_operand.vmem [shape: f32[1,128], index: 4, kind: input, shape index: {}]   ;;  %s2400_s5 = inlined_call_operand.vmem [shape: f32[1,128], index: 5, kind: input, shape index: {}]   ;;  %s2401_s6 = inlined_call_operand.vmem [shape: f32[1,128], index: 6, kind: input, shape index: {}]   ;;  %s2402_s7 = inlined_call_operand.hbm [shape: f32[256,128], index: 7, kind: output, shape index: {}]  }
   0x1   :  { %14 = vsyncpa [#allocation3 + $0x1], 0 }
   0x2   :  { %15 = vsyncpa [#allocation6], 0 }
   0x3   :  { %16 = vsyncpa [#allocation9], 0 }
   0x4   :  { %17 = vsyncpa [#allocation4], 0 }
   0x5   :  { %19 = vsyncpa [#allocation4 + $0x1], 0  ;;  %s1913_s24 = smov 0   ;;  %s1915_s25 = smov 0  }
   0x6   :  { %s1917_s26 = smov 0   ;;  %s1919_s27 = smov 0  }
   0x7 LB: > { %s1934_s28 = sadd.s32 4294967295, %s1860_s27   ;;  %s1260_s29 = sadd.s32 4294967294, %s1860_s27   ;;  %s1860_s27 = sphi %s1919_s27, %s2428_s27   ;;  %s1856_s26 = sphi %s1917_s26, %s2427_s26   ;;  %s1852_s25 = sphi %s1915_s25, %s2426_s25   ;;  %s1848_s24 = sphi %s1913_s24, %s2425_s24  }
   0x8   : > { %p45_p0 = scmp.ne.s32.totalorder %s1852_s25, %s1848_s24  ;;  %p2403_p1 = scmp.eq.s32.totalorder %s1934_s28, 0 }
   0x9   : > { %p201_p3 = scmp.eq.s32.totalorder %s1260_s29, 1  ;;  %p1261_p5 = scmp.ge.s32.totalorder %s1860_s27, 1 }
   0xa   : > { %p1943_p4 = por %p2403_p1, %p45_p0  ;;  %p208_p7 = scmp.lt.s32.totalorder %s1860_s27, 3 }
   0xb   : > { %p1948_p6 = por %p201_p3, %p45_p0  ;;  %s1862_s10 = smov [#allocation5]  }
   0xc   : > { %s2407_s30 = scalar_select %p1943_p4, 1, 0 }
   0xd   : > { %s2408_s8 = scalar_select %p1948_p6, 1, 0 }
   0xe   : > { %p1953_p8 = pnand %p1261_p5, %p208_p7  ;;  %s220_s11 = sshll.u32 %s1862_s10, 4  ;;  %s1957_s11 = int_to_ptr.vmem [resolvable:$true] %s220_s11 }
   0xf   : > { %2409 = sst [smem:[#allocation15_spill]] %s2408_s8  ;;  %s1863_s13 = smov [#allocation7]  }
  0x10   : > { %s2410_s9 = scalar_select %p1953_p8, 1, 0 }
  0x11   : > { %p1485_p9 = pneg %p1953_p8  ;;  %s233_s14 = sshll.u32 %s1863_s13, 4  ;;  %s1968_s14 = int_to_ptr.vmem [resolvable:$true] %s233_s14 }
  0x12   : > { %s1864_s15 = smov [#allocation8]   ;;  %s1672_s19 = scalar_lea.hbm %s2396_s1, 1024 }
  0x13   : > { %p1964_p11 = pnand %p1485_p9, %p2403_p1  ;;  %s1970_s16 = sshll.u32 %s1864_s15, 4  ;;  %s247_s16 = int_to_ptr.vmem [resolvable:$true] %s1970_s16 }
  0x14   : > { %p1673_p12 = scmp.ne.s32.totalorder %s2396_s1, %s1672_s19  ;;  %p1679_p5 = scmp.lt.u32.totalorder %s1672_s19, %s2396_s1 }
  0x15   : > { %p1980_p13 = pneg %p1964_p11 }
  0x17   : > { %p1675_p0 = pnand %p1980_p13, %p1673_p12 }
  0x19   : > { %p1676_p3 = pneg %p1675_p0 }
  0x1b   : > { %p1681_p7 = pnand %p1679_p5, %p1676_p3 }
  0x1d   : > { %1684 = shalt.err (!%p1681_p7)
}
  0x1e   : > { %s1685_s10 = scalar_lea.vmem %s1957_s11, 1024  ;;  %p1693_p2 = scmp.lt.s32.totalorder %s1957_s11, %s1957_s11 }
  0x1f   : > { %p1686_p9 = scmp.ne.s32.totalorder %s1957_s11, %s1685_s10  ;;  %p1694_p6 = scmp.lt.s32.totalorder %s1685_s10, %s1685_s10 }
  0x21   : > { %p1688_p10 = pnand %p1686_p9, %p1980_p13  ;;  %p1695_p12 = por %p1694_p6, %p1693_p2 }
  0x23   : > { %p1689_p1 = pneg %p1688_p10 }
  0x25   : > { %p1696_p0 = pnand %p1695_p12, %p1689_p1 }
  0x27   : > { %1699 = shalt.err (!%p1696_p0)
}
  0x28   : > { %s1865_s13 = smov 64   ;;  %s1866_s15 = smov 4  }
  0x29   : > { %1488 = dma.hbm_to_vmem [thread:$0]  (!%p1964_p11), %s2396_s1, 1024, %s1957_s11, [#allocation6], %s1865_s13, %s1865_s13, %s1866_s15  }
  0x2a   : > { %s1700_s21 = scalar_lea.hbm %s2397_s2, 1024 }
  0x2b   : > { %p1701_p1 = scmp.ne.s32.totalorder %s2397_s2, %s1700_s21  ;;  %p1707_p10 = scmp.lt.u32.totalorder %s1700_s21, %s2397_s2 }
  0x2d   : > { %p1703_p2 = pnand %p1701_p1, %p1980_p13 }
  0x2f   : > { %p1704_p6 = pneg %p1703_p2 }
  0x31   : > { %p1709_p3 = pnand %p1707_p10, %p1704_p6 }
  0x33   : > { %1712 = shalt.err (!%p1709_p3)
}
  0x34   : > { %s1713_s11 = scalar_lea.vmem %s1968_s14, 1024  ;;  %p1721_p12 = scmp.lt.s32.totalorder %s1968_s14, %s1968_s14 }
  0x35   : > { %p1714_p5 = scmp.ne.s32.totalorder %s1968_s14, %s1713_s11  ;;  %p1722_p0 = scmp.lt.s32.totalorder %s1713_s11, %s1713_s11 }
  0x37   : > { %p1716_p7 = pnand %p1714_p5, %p1980_p13  ;;  %p1723_p1 = por %p1722_p0, %p1721_p12 }
  0x39   : > { %p1717_p9 = pneg %p1716_p7 }
  0x3b   : > { %p1724_p2 = pnand %p1723_p1, %p1717_p9 }
  0x3d   : > { %1727 = shalt.err (!%p1724_p2)
}
  0x3e   : > { %1491 = dma.hbm_to_vmem [thread:$0]  (!%p1964_p11), %s2397_s2, 1024, %s1968_s14, [#allocation6], %s1865_s13, %s1865_s13, %s1866_s15  }
  0x3f   : > { %s1728_s20 = scalar_lea.hbm %s2398_s3, 1024 }
  0x40   : > { %p1729_p6 = scmp.ne.s32.totalorder %s2398_s3, %s1728_s20  ;;  %p1735_p5 = scmp.lt.u32.totalorder %s1728_s20, %s2398_s3 }
  0x42   : > { %p1731_p10 = pnand %p1729_p6, %p1980_p13 }
  0x44   : > { %p1732_p3 = pneg %p1731_p10 }
  0x46   : > { %p1737_p7 = pnand %p1735_p5, %p1732_p3 }
  0x48   : > { %1740 = shalt.err (!%p1737_p7)
}
  0x49   : > { %s1741_s11 = scalar_lea.vmem %s247_s16, 1024  ;;  %p1749_p1 = scmp.lt.s32.totalorder %s247_s16, %s247_s16 }
  0x4a   : > { %p1742_p9 = scmp.ne.s32.totalorder %s247_s16, %s1741_s11  ;;  %p1750_p2 = scmp.lt.s32.totalorder %s1741_s11, %s1741_s11 }
  0x4c   : > { %p1744_p12 = pnand %p1742_p9, %p1980_p13  ;;  %p1751_p4 = por %p1750_p2, %p1749_p1 }
  0x4e   : > { %p1745_p0 = pneg %p1744_p12 }
  0x50   : > { %p1752_p8 = pnand %p1751_p4, %p1745_p0 }
  0x52   : > { %1755 = shalt.err (!%p1752_p8)
}
  0x53   : > { %1494 = dma.hbm_to_vmem [thread:$0]  (!%p1964_p11), %s2398_s3, 1024, %s247_s16, [#allocation9], %s1865_s13, %s1865_s13, %s1866_s15  }
  0x54   : > { %s2053_s22 = sadd.s32 1, %s1860_s27   ;;  %s32_s17 = sadd.s32 1, %s1856_s26 }
  0x55   : > { %s29_s12 = ssub.s32 %s1860_s27, %s2053_s22  ;;  %p39_p8 = scmp.ne.s32.totalorder %s1856_s26, %s1852_s25 }
  0x56   : > { %p30_p4 = scmp.eq.s32.totalorder %s29_s12, 0  ;;  %p40_p13 = scmp.eq.s32.totalorder %s1860_s27, 0 }
  0x57   : > { %p1506_p6 = scmp.lt.s32.totalorder %s1860_s27, 2  ;;  %p2413_p3 = scmp.eq.s32.totalorder %s1934_s28, 1 }
  0x58   : > { %s2063_s18 = scalar_select %p30_p4, %s1856_s26, %s32_s17  }
  0x59   : > { %p41_p10 = por %p40_p13, %p39_p8  ;;  %p2067_p5 = por %p2413_p3, %p39_p8 }
  0x5a   : > { %s269_s20 = sand.u32 1, %s1856_s26   ;;  %s1307_s21 = sshll.u32 %s1860_s27, 11 }
  0x5b   : > { %s1266_s16 = sshll.u32 %s269_s20, 7  ;;  %s2076_s23 = scalar_lea.hbm %s2395_s0, %s1307_s21 }
  0x5c   : > { %s273_s29 = scalar_lea.vmem [#allocation2], %s1266_s16  ;;  %p2078_p11 = pnand %p1506_p6, %p41_p10 }
  0x5d   : > { %s280_s10 = sshll.u32 %s273_s29, 4  ;;  %s2084_s14 = scalar_lea.sflag [#allocation3], %s269_s20  ;;  %s2082_s10 = int_to_ptr.vmem [resolvable:$true] %s280_s10 }
  0x5e   : > { %s1756_s8 = scalar_lea.hbm %s2076_s23, 2048  ;;  %p1758_p9 = pneg %p2078_p11 }
  0x5f   : > { %p1757_p7 = scmp.ne.s32.totalorder %s2076_s23, %s1756_s8  ;;  %s1761_s21 = scalar_lea.hbm %s2395_s0, 4096 }
  0x60   : > { %p1762_p1 = scmp.lt.u32.totalorder %s2076_s23, %s2395_s0  ;;  %p1763_p2 = scmp.lt.u32.totalorder %s1761_s21, %s1756_s8 }
  0x61   : > { %p1759_p12 = pnand %p1758_p9, %p1757_p7  ;;  %p1765_p8 = scmp.lt.u32.totalorder %s1756_s8, %s2076_s23 }
  0x62   : > { %p1764_p4 = por %p1763_p2, %p1762_p1 }
  0x63   : > { %p1760_p0 = pneg %p1759_p12 }
  0x64   : > { %p1766_p13 = por %p1765_p8, %p1764_p4 }
  0x66   : > { %p1767_p6 = pnand %p1766_p13, %p1760_p0 }
  0x68   : > { %1770 = shalt.err (!%p1767_p6)
}
  0x69   : > { %s1771_s20 = scalar_lea.vmem %s2082_s10, 2048  ;;  %s1867_s15 = smov [#allocation2]  }
  0x6a   : > { %p1772_p10 = scmp.ne.s32.totalorder %s2082_s10, %s1771_s20  ;;  %s1776_s29 = sshll.u32 %s1867_s15, 4  ;;  %s1777_s29 = int_to_ptr.vmem [resolvable:$false] %s1776_s29 }
  0x6b   : > { %s1778_s12 = scalar_lea.vmem %s1777_s29, 4096  ;;  %p1779_p12 = scmp.lt.s32.totalorder %s2082_s10, %s1777_s29 }
  0x6c   : > { %p1774_p3 = pnand %p1772_p10, %p1758_p9  ;;  %p1780_p1 = scmp.lt.s32.totalorder %s1778_s12, %s1771_s20 }
  0x6e   : > { %p1775_p7 = pneg %p1774_p3  ;;  %p1781_p2 = por %p1780_p1, %p1779_p12 }
  0x70   : > { %p1782_p4 = pnand %p1781_p2, %p1775_p7 }
  0x72   : > { %1785 = shalt.err (!%p1782_p4)
}
  0x73   : > { %s1868_s8 = smov 128   ;;  %s1869_s17 = smov 8  }
  0x74   : > { %1498 = dma.hbm_to_vmem [thread:$0]  (!%p2078_p11), %s2076_s23, 2048, %s2082_s10, %s2084_s14, %s1868_s8, %s1868_s8, %s1869_s17  }
  0x75   : > { %p2416_p9 = scmp.ne.s32.totalorder %s2410_s9, 0 }
  0x76   : > { %s2115_s21 = sand.u32 (!%p2416_p9), 1, %s1852_s25   ;;  %p2417_p0 = scmp.ne.s32.totalorder (!%p2416_p9), %s2407_s30, 0 }
  0x77   : > { %292 = sbr.rel (%p2416_p9) target bundleno = 920 (0x398), region = 48  ;;  %s1270_s16 = sshll.u32 (!%p2416_p9), %s2115_s21, 7 }
  0x78   : > { %s295_s13 = scalar_lea.sflag (!%p2416_p9), [#allocation3], %s2115_s21  ;;  %s2121_s20 = scalar_lea.vmem (!%p2416_p9), [#allocation2], %s1270_s16 }
  0x7e   : > { %1831 = dma.done.wait (%p2417_p0), %s295_s13, 2048  }
  0x7f   : > { %1833 = vsyncadd (%p2417_p0), %s295_s13, 4294965248  ;;  %p2418_p11 = scmp.eq.s32.totalorder %s1934_s28, 0 }
  0x81   : > { %1835 = dma.done.wait (%p2418_p11), [#allocation6], 2048   ;;  %p2419_p8 = pmov %p2418_p11 }
  0x83   : > { %1837 = vsyncadd (%p2419_p8), [#allocation6], 4294965248  ;;  %p2420_p13 = pmov %p2419_p8 }
  0x84   : > { %p2421_p6 = pmov %p2419_p8 }
  0x85   : > { %1839 = dma.done.wait (%p2420_p13), [#allocation9], 1024  }
  0x86   : > { %1841 = vsyncadd (%p2421_p6), [#allocation9], 4294966272  ;;  %v1552_v0 = vld [vmem:[#allocation5] sm:$0xff]   ;;  %v1553_v1 = vld [vmem:[#allocation5 + $0x8] sm:$0xff]   ;;  %s2313_s15 = scalar_lea.vmem [#allocation10], %s1270_s16  ;;  %s1308_s29 = sshll.u32 %s1934_s28, 11 }
  0x87   : > { %1357 = vmatprep.subr.bf16.mxu0 %v1552_v0  ;;  %v1554_v2 = vld [vmem:[#allocation5 + $0x10] sm:$0xff]   ;;  %v1555_v3 = vld [vmem:[#allocation5 + $0x18] sm:$0xff]   ;;  %v344_v4 = vld [vmem:[%s2121_s20] sm:$0xff]  ;;  %s1158_s12 = sshll.u32 %s2313_s15, 4  ;;  %s2346_s16 = scalar_lea.hbm %s2402_s7, %s1308_s29  ;;  %s2348_s12 = int_to_ptr.vmem [resolvable:$true] %s1158_s12 }
  0x88   : > { %1358 = vmatpush3.bf16.msra.mxu0 %v1552_v0  ;;  %v345_v5 = vld [vmem:[%s2121_s20 + $0x8] sm:$0xff]  ;;  %v1556_v7 = vld [vmem:[#allocation5 + $0x20] sm:$0xff]   ;;  %v1558_v10 = vld [vmem:[#allocation5 + $0x30] sm:$0xff]   ;;  %s1145_s28 = scalar_lea.sflag [#allocation4], %s2115_s21  ;;  %s1786_s13 = scalar_lea.vmem %s2348_s12, 2048 }
  0x89   : > { %1359 = vmatprep.subr.bf16.mxu0 %v1553_v1  ;;  %v360_v6 = vpack.c.bf16 %v345_v5, %v344_v4  ;;  %v1557_v8 = vld [vmem:[#allocation5 + $0x28] sm:$0xff]   ;;  %v1560_v9 = vld [vmem:[#allocation7] sm:$0xff]   ;;  %v1559_v11 = vld [vmem:[#allocation5 + $0x38] sm:$0xff]   ;;  %p1787_p10 = scmp.ne.s32.totalorder %s2348_s12, %s1786_s13 }
  0x8a   : > { %1389 = vmatprep.subr.bf16.mxu1 %v1560_v9  ;;  %v346_v12 = vld [vmem:[%s2121_s20 + $0x10] sm:$0xff]  ;;  %v347_v13 = vld [vmem:[%s2121_s20 + $0x18] sm:$0xff]  ;;  %v348_v14 = vld [vmem:[%s2121_s20 + $0x20] sm:$0xff] }
  0x8b   : > { %1373 = vmatprep.mubr.bf16.mxu0 %v360_v6  ;;  %1390 = vmatpush3.bf16.msra.mxu1 %v1560_v9  ;;  %v349_v15 = vld [vmem:[%s2121_s20 + $0x28] sm:$0xff]  ;;  %v361_v16 = vpack.c.bf16 %v347_v13, %v346_v12  ;;  %v350_v18 = vld [vmem:[%s2121_s20 + $0x30] sm:$0xff]  ;;  %v351_v19 = vld [vmem:[%s2121_s20 + $0x38] sm:$0xff]  ;;  %p1788_p3 = pnand %p1787_p10, %p2067_p5 }
  0x8c   : > { %1360 = vmatpush3.bf16.msra.mxu0 %v1553_v1  ;;  %v362_v17 = vpack.c.bf16 %v349_v15, %v348_v14  ;;  %v352_v20 = vld [vmem:[%s2121_s20 + $0x40] sm:$0xff]  ;;  %v353_v21 = vld [vmem:[%s2121_s20 + $0x48] sm:$0xff]  ;;  %v363_v22 = vpack.c.bf16 %v351_v19, %v350_v18  ;;  %v354_v24 = vld [vmem:[%s2121_s20 + $0x50] sm:$0xff] }
  0x8d   : > { %1361 = vmatprep.subr.bf16.mxu0 %v1554_v2  ;;  %v364_v23 = vpack.c.bf16 %v353_v21, %v352_v20  ;;  %v355_v25 = vld [vmem:[%s2121_s20 + $0x58] sm:$0xff]  ;;  %v356_v26 = vld [vmem:[%s2121_s20 + $0x60] sm:$0xff]  ;;  %v357_v27 = vld [vmem:[%s2121_s20 + $0x68] sm:$0xff]  ;;  %p1789_p7 = pneg %p1788_p3 }
  0x8e   : > { %v365_v28 = vpack.c.bf16 %v355_v25, %v354_v24  ;;  %v366_v29 = vpack.c.bf16 %v357_v27, %v356_v26  ;;  %v358_v30 = vld [vmem:[%s2121_s20 + $0x70] sm:$0xff]  ;;  %v359_v31 = vld [vmem:[%s2121_s20 + $0x78] sm:$0xff]  ;;  %v1561_v33 = vld [vmem:[#allocation7 + $0x8] sm:$0xff]   ;;  %s1870_s20 = smov [#allocation10]  }
  0x8f   : > { %v367_v32 = vpack.c.bf16 %v359_v31, %v358_v30  ;;  %1391 = vmatprep.subr.bf16.mxu1 %v1561_v33  ;;  %v1562_v34 = vld [vmem:[#allocation7 + $0x10] sm:$0xff]   ;;  %v1563_v35 = vld [vmem:[#allocation7 + $0x18] sm:$0xff]   ;;  %v1564_v36 = vld [vmem:[#allocation7 + $0x20] sm:$0xff]   ;;  %s1790_s30 = sshll.u32 %s1870_s20, 4  ;;  %s1791_s30 = int_to_ptr.vmem [resolvable:$false] %s1790_s30 }
  0x90   : > { %1362 = vmatpush3.bf16.msra.mxu0 %v1554_v2  ;;  %1392 = vmatpush3.bf16.msra.mxu1 %v1561_v33  ;;  %v1565_v37 = vld [vmem:[#allocation7 + $0x28] sm:$0xff]   ;;  %v1566_v38 = vld [vmem:[#allocation7 + $0x30] sm:$0xff]   ;;  %v1567_v39 = vld [vmem:[#allocation7 + $0x38] sm:$0xff]   ;;  %s1792_s9 = scalar_lea.vmem %s1791_s30, 4096  ;;  %p1793_p12 = scmp.lt.s32.totalorder %s2348_s12, %s1791_s30 }
  0x91   : > { %1363 = vmatprep.subr.bf16.mxu0 %v1555_v3  ;;  %1393 = vmatprep.subr.bf16.mxu1 %v1562_v34  ;;  %v2151_v40 = vld [vmem:[#allocation8] sm:$0xff]   ;;  %p1794_p1 = scmp.lt.s32.totalorder %s1792_s9, %s1786_s13 }
  0x92   : > { %v2159_v41 = vld [vmem:[%s2399_s4] ss:$0 sm:$0xff] }
  0x93   : > { %p1795_p2 = por %p1794_p1, %p1793_p12 }
  0x94   : > { %1364 = vmatpush3.bf16.msra.mxu0 %v1555_v3  ;;  %1394 = vmatpush3.bf16.msra.mxu1 %v1562_v34 }
  0x95   : > { %1365 = vmatprep.subr.bf16.mxu0 %v1556_v7  ;;  %1395 = vmatprep.subr.bf16.mxu1 %v1563_v35  ;;  %p1796_p4 = pnand %p1795_p2, %p1789_p7 }
  0x98   : > { %1366 = vmatpush3.bf16.msra.mxu0 %v1556_v7  ;;  %1396 = vmatpush3.bf16.msra.mxu1 %v1563_v35 }
  0x99   : > { %1367 = vmatprep.subr.bf16.mxu0 %v1557_v8  ;;  %1397 = vmatprep.subr.bf16.mxu1 %v1564_v36 }
  0x9c   : > { %1368 = vmatpush3.bf16.msra.mxu0 %v1557_v8  ;;  %1398 = vmatpush3.bf16.msra.mxu1 %v1564_v36 }
  0x9d   : > { %1369 = vmatprep.subr.bf16.mxu0 %v1558_v10  ;;  %1399 = vmatprep.subr.bf16.mxu1 %v1565_v37 }
  0xa0   : > { %1370 = vmatpush3.bf16.msra.mxu0 %v1558_v10  ;;  %1400 = vmatpush3.bf16.msra.mxu1 %v1565_v37 }
  0xa1   : > { %1371 = vmatprep.subr.bf16.mxu0 %v1559_v11  ;;  %1401 = vmatprep.subr.bf16.mxu1 %v1566_v38 }
  0xa4   : > { %1372 = vmatpush3.bf16.msra.mxu0 %v1559_v11  ;;  %1402 = vmatpush3.bf16.msra.mxu1 %v1566_v38 }
  0xa5   : > { %1403 = vmatprep.subr.bf16.mxu1 %v1567_v39  ;;  %1421 = vmatprep.subr.bf16.mxu0 %v2151_v40 }
  0xa7   : > { %1374 = vmatmul.mubr.bf16.vlgmr.msra.gmra.mrb[0].mxu0 %v361_v16 }
  0xa8   : > { %1377 = vmatprep.mubr.bf16.mxu0 %v362_v17  ;;  %1404 = vmatpush3.bf16.msra.mxu1 %v1567_v39 }
  0xa9   : > { %1453 = vmatprep.subr.bf16.mxu1 %v2151_v40  ;;  %1422 = vmatpush3.bf16.msra.mxu0 %v2151_v40 }
  0xaf   : > { %1378 = vmatmul.mubr.bf16.gmra.mrb[4].mxu0 %v363_v22 }
  0xb0   : > { %1381 = vmatprep.mubr.bf16.mxu0 %v364_v23 }
  0xb7   : > { %1382 = vmatmul.mubr.bf16.gmra.mrb[8].mxu0 %v365_v28 }
  0xb8   : > { %1385 = vmatprep.mubr.bf16.mxu0 %v366_v29 }
  0xbf   : > { %1386 = vmatmul.mubr.bf16.gmra.mrb[12].mxu0 %v367_v32 }
 0x17a   : > { %v1375_v42 = vpop.f32.mrb[0].mxu0 }
 0x17b   : > { %v482_v43 = vadd.f32 %v1375_v42, %v2159_v41  ;;  %v473_v44 = vpop.f32.mrb[1].mxu0 }
 0x17c   : > { %v474_v45 = vadd.f32 %v2159_v41, %v473_v44  ;;  %v1376_v46 = vpop.f32.mrb[2].mxu0 }
 0x17d   : > { %v538_v47 = vmul.f32 0.5, %v482_v43  ;;  %v485_v48 = vadd.f32 %v1376_v46, %v2159_v41  ;;  %v476_v49 = vpop.f32.mrb[3].mxu0 }
 0x17e   : > { %v536_v50 = vmul.f32 0.5, %v474_v45  ;;  %v477_v51 = vadd.f32 %v2159_v41, %v476_v49 }
 0x17f   : > { %1576 = vtanh.f32 %v538_v47  ;;  %v539_v52 = vmul.f32 0.5, %v485_v48 }
 0x180   : > { %1578 = vtanh.f32 %v536_v50  ;;  %v537_v53 = vmul.f32 0.5, %v477_v51 }
 0x181   : > { %1580 = vtanh.f32 %v539_v52 }
 0x182   : > { %1582 = vtanh.f32 %v537_v53  ;;  %v1379_v54 = vpop.f32.mrb[4].mxu0 }
 0x183   : > { %v2166_v55 = vadd.f32 %v1379_v54, %v2159_v41  ;;  %v489_v56 = vpop.f32.mrb[5].mxu0 }
 0x184   : > { %v2169_v57 = vadd.f32 %v2159_v41, %v489_v56  ;;  %v1380_v58 = vpop.f32.mrb[6].mxu0 }
 0x185   : > { %v542_v59 = vmul.f32 0.5, %v2166_v55  ;;  %v2173_v60 = vadd.f32 %v1380_v58, %v2159_v41  ;;  %v492_v61 = vpop.f32.mrb[7].mxu0 }
 0x186   : > { %v540_v62 = vmul.f32 0.5, %v2169_v57  ;;  %v2177_v63 = vadd.f32 %v2159_v41, %v492_v61 }
 0x187   : > { %1584 = vtanh.f32 %v542_v59  ;;  %v543_v0 = vmul.f32 0.5, %v2173_v60 }
 0x188   : > { %1586 = vtanh.f32 %v540_v62  ;;  %v541_v1 = vmul.f32 0.5, %v2177_v63 }
 0x189   : > { %v1577_v2 = vpop.eup %1576  ;;  %1588 = vtanh.f32 %v543_v0 }
 0x18a   : > { %v1579_v3 = vpop.eup %1578  ;;  %v570_v4 = vmul.f32 0.5, %v1577_v2  ;;  %1590 = vtanh.f32 %v541_v1  ;;  %v1383_v5 = vpop.f32.mrb[8].mxu0 }
 0x18b   : > { %v1581_v6 = vpop.eup %1580  ;;  %v2182_v7 = vadd.f32 %v1383_v5, %v2159_v41  ;;  %v505_v8 = vpop.f32.mrb[9].mxu0  ;;  %v568_v9 = vmul.f32 0.5, %v1579_v3 }
 0x18c   : > { %v1583_v10 = vpop.eup %1582  ;;  %v586_v11 = vadd.f32 0.5, %v570_v4  ;;  %v571_v12 = vmul.f32 0.5, %v1581_v6  ;;  %v2185_v13 = vadd.f32 %v2159_v41, %v505_v8  ;;  %v1384_v14 = vpop.f32.mrb[10].mxu0 }
 0x18d   : > { %v546_v15 = vmul.f32 0.5, %v2182_v7  ;;  %v2189_v16 = vadd.f32 %v1384_v14, %v2159_v41  ;;  %v508_v17 = vpop.f32.mrb[11].mxu0  ;;  %v569_v18 = vmul.f32 0.5, %v1583_v10  ;;  %v584_v19 = vadd.f32 0.5, %v568_v9 }
 0x18e   : > { %v587_v20 = vadd.f32 0.5, %v571_v12  ;;  %v544_v21 = vmul.f32 0.5, %v2185_v13  ;;  %v2193_v22 = vadd.f32 %v2159_v41, %v508_v17  ;;  %v602_v25 = vmul.f32 %v586_v11, %v482_v43 }
 0x18f   : > { %1592 = vtanh.f32 %v546_v15  ;;  %v547_v23 = vmul.f32 0.5, %v2189_v16  ;;  %v585_v24 = vadd.f32 0.5, %v569_v18  ;;  %v600_v29 = vmul.f32 %v584_v19, %v474_v45 }
 0x190   : > { %v603_v26 = vmul.f32 %v587_v20, %v485_v48  ;;  %1594 = vtanh.f32 %v544_v21  ;;  %v545_v27 = vmul.f32 0.5, %v2193_v22 }
 0x191   : > { %v1585_v28 = vpop.eup %1584  ;;  %1596 = vtanh.f32 %v547_v23  ;;  %v601_v30 = vmul.f32 %v585_v24, %v477_v51 }
 0x192   : > { %v1587_v31 = vpop.eup %1586  ;;  %v574_v32 = vmul.f32 0.5, %v1585_v28  ;;  %1598 = vtanh.f32 %v545_v27  ;;  %v1387_v33 = vpop.f32.mrb[12].mxu0  ;;  %v617_v34 = vpack.c.bf16 %v603_v26, %v602_v25 }
 0x193   : > { %v1589_v35 = vpop.eup %1588  ;;  %v572_v36 = vmul.f32 0.5, %v1587_v31  ;;  %v2198_v37 = vadd.f32 %v1387_v33, %v2159_v41  ;;  %v521_v38 = vpop.f32.mrb[13].mxu0  ;;  %v616_v39 = vpack.c.bf16 %v601_v30, %v600_v29 }
 0x194   : > { %v1591_v42 = vpop.eup %1590  ;;  %v590_v43 = vadd.f32 0.5, %v574_v32  ;;  %v575_v44 = vmul.f32 0.5, %v1589_v35  ;;  %v522_v46 = vadd.f32 %v2159_v41, %v521_v38  ;;  %v1388_v47 = vpop.f32.mrb[14].mxu0  ;;  %v1570_v35 = vld [vmem:[#allocation8 + $0x10] sm:$0xff]   ;;  %v1573_v38 = vld [vmem:[#allocation8 + $0x28] sm:$0xff]  }
 0x195   : > { %v588_v45 = vadd.f32 0.5, %v572_v36  ;;  %v573_v48 = vmul.f32 0.5, %v1591_v42  ;;  %v550_v49 = vmul.f32 0.5, %v2198_v37  ;;  %v533_v50 = vadd.f32 %v1388_v47, %v2159_v41  ;;  %v524_v51 = vpop.f32.mrb[15].mxu0  ;;  %1405 = vmatprep.mubr.bf16.mxu1 %v616_v39  ;;  %v1571_v36 = vld [vmem:[#allocation8 + $0x18] sm:$0xff]   ;;  %v1574_v39 = vld [vmem:[#allocation8 + $0x30] sm:$0xff]  }
 0x196   : > { %v591_v52 = vadd.f32 0.5, %v575_v44  ;;  %v548_v53 = vmul.f32 0.5, %v522_v46  ;;  %v525_v54 = vadd.f32 %v2159_v41, %v524_v51  ;;  %1406 = vmatmul.mubr.bf16.vlgmr.msra.gmra.mrb[0].mxu1 %v617_v34  ;;  %v606_v59 = vmul.f32 %v590_v43, %v2166_v55  ;;  %v1569_v34 = vld [vmem:[#allocation8 + $0x8] sm:$0xff]   ;;  %v1575_v42 = vld [vmem:[#allocation8 + $0x38] sm:$0xff]   ;;  %v2217_v43 = vld [vmem:[%s2400_s5] ss:$0 sm:$0xff] }
 0x197   : > { %v589_v56 = vadd.f32 0.5, %v573_v48  ;;  %1600 = vtanh.f32 %v550_v49  ;;  %v551_v58 = vmul.f32 0.5, %v533_v50  ;;  %1461 = vmatpush3.bf16.msra.mxu1 %v2151_v40  ;;  %v604_v1 = vmul.f32 %v588_v45, %v2169_v57  ;;  %1423 = vmatprep.subr.bf16.mxu0 %v1569_v34 }
 0x198   : > { %v607_v61 = vmul.f32 %v591_v52, %v2173_v60  ;;  %1602 = vtanh.f32 %v548_v53  ;;  %v549_v62 = vmul.f32 0.5, %v525_v54  ;;  %1454 = vmatprep.subr.bf16.mxu1 %v1569_v34  ;;  %1424 = vmatpush3.bf16.msra.mxu0 %v1569_v34 }
 0x199   : > { %v1593_v0 = vpop.eup %1592  ;;  %v605_v2 = vmul.f32 %v589_v56, %v2177_v63  ;;  %1604 = vtanh.f32 %v551_v58  ;;  %1425 = vmatprep.subr.bf16.mxu0 %v1570_v35 }
 0x19a   : > { %v1595_v3 = vpop.eup %1594  ;;  %v578_v41 = vmul.f32 0.5, %v1593_v0  ;;  %1606 = vtanh.f32 %v549_v62  ;;  %v619_v4 = vpack.c.bf16 %v607_v61, %v606_v59 }
 0x19b   : > { %v1597_v5 = vpop.eup %1596  ;;  %v576_v6 = vmul.f32 0.5, %v1595_v3  ;;  %v618_v8 = vpack.c.bf16 %v605_v2, %v604_v1  ;;  %1462 = vmatpush3.bf16.msra.mxu1 %v1569_v34 }
 0x19c   : > { %v1599_v40 = vpop.eup %1598  ;;  %v594_v9 = vadd.f32 0.5, %v578_v41  ;;  %v579_v55 = vmul.f32 0.5, %v1597_v5  ;;  %1455 = vmatprep.subr.bf16.mxu1 %v1570_v35  ;;  %1426 = vmatpush3.bf16.msra.mxu0 %v1570_v35 }
 0x19d   : > { %v592_v10 = vadd.f32 0.5, %v576_v6  ;;  %v577_v60 = vmul.f32 0.5, %v1599_v40  ;;  %1409 = vmatprep.mubr.bf16.mxu1 %v618_v8  ;;  %1427 = vmatprep.subr.bf16.mxu0 %v1571_v36 }
 0x19e   : > { %v595_v11 = vadd.f32 0.5, %v579_v55  ;;  %1410 = vmatmul.mubr.bf16.gmra.mrb[4].mxu1 %v619_v4  ;;  %v610_v57 = vmul.f32 %v594_v9, %v2182_v7 }
 0x19f   : > { %v593_v12 = vadd.f32 0.5, %v577_v60  ;;  %v608_v15 = vmul.f32 %v592_v10, %v2185_v13  ;;  %1463 = vmatpush3.bf16.msra.mxu1 %v1570_v35 }
 0x1a0   : > { %v611_v63 = vmul.f32 %v595_v11, %v2189_v16  ;;  %1456 = vmatprep.subr.bf16.mxu1 %v1571_v36  ;;  %1428 = vmatpush3.bf16.msra.mxu0 %v1571_v36 }
 0x1a1   : > { %v1601_v14 = vpop.eup %1600  ;;  %v609_v17 = vmul.f32 %v593_v12, %v2193_v22 }
 0x1a2   : > { %v1603_v18 = vpop.eup %1602  ;;  %v582_v19 = vmul.f32 0.5, %v1601_v14  ;;  %v621_v20 = vpack.c.bf16 %v611_v63, %v610_v57 }
 0x1a3   : > { %v1605_v21 = vpop.eup %1604  ;;  %v580_v23 = vmul.f32 0.5, %v1603_v18  ;;  %v620_v24 = vpack.c.bf16 %v609_v17, %v608_v15  ;;  %1464 = vmatpush3.bf16.msra.mxu1 %v1571_v36 }
 0x1a4   : > { %v1607_v25 = vpop.eup %1606  ;;  %v598_v26 = vadd.f32 0.5, %v582_v19  ;;  %v583_v27 = vmul.f32 0.5, %v1605_v21 }
 0x1a5   : > { %v596_v28 = vadd.f32 0.5, %v580_v23  ;;  %v581_v29 = vmul.f32 0.5, %v1607_v25  ;;  %1413 = vmatprep.mubr.bf16.mxu1 %v620_v24 }
 0x1a6   : > { %v599_v7 = vadd.f32 0.5, %v583_v27  ;;  %1414 = vmatmul.mubr.bf16.gmra.mrb[8].mxu1 %v621_v20  ;;  %v614_v30 = vmul.f32 %v598_v26, %v2198_v37  ;;  %v1572_v37 = vld [vmem:[#allocation8 + $0x20] sm:$0xff]  }
 0x1a7   : > { %v597_v16 = vadd.f32 0.5, %v581_v29  ;;  %v612_v31 = vmul.f32 %v596_v28, %v522_v46  ;;  %1429 = vmatprep.subr.bf16.mxu0 %v1572_v37  ;;  %1457 = vmatprep.subr.bf16.mxu1 %v1572_v37 }
 0x1a8   : > { %v615_v13 = vmul.f32 %v599_v7, %v533_v50  ;;  %1430 = vmatpush3.bf16.msra.mxu0 %v1572_v37  ;;  %1465 = vmatpush3.bf16.msra.mxu1 %v1572_v37 }
 0x1a9   : > { %v613_v22 = vmul.f32 %v597_v16, %v525_v54  ;;  %1431 = vmatprep.subr.bf16.mxu0 %v1573_v38  ;;  %1458 = vmatprep.subr.bf16.mxu1 %v1573_v38 }
 0x1aa   : > { %v623_v32 = vpack.c.bf16 %v615_v13, %v614_v30 }
 0x1ab   : > { %v622_v33 = vpack.c.bf16 %v613_v22, %v612_v31 }
 0x1ac   : > { %1432 = vmatpush3.bf16.msra.mxu0 %v1573_v38  ;;  %1466 = vmatpush3.bf16.msra.mxu1 %v1573_v38 }
 0x1ad   : > { %1417 = vmatprep.mubr.bf16.mxu1 %v622_v33  ;;  %1433 = vmatprep.subr.bf16.mxu0 %v1574_v39 }
 0x1ae   : > { %1418 = vmatmul.mubr.bf16.gmra.mrb[12].mxu1 %v623_v32  ;;  %1459 = vmatprep.subr.bf16.mxu1 %v1574_v39 }
 0x1b0   : > { %1434 = vmatpush3.bf16.msra.mxu0 %v1574_v39  ;;  %1467 = vmatpush3.bf16.msra.mxu1 %v1574_v39 }
 0x1b1   : > { %1435 = vmatprep.subr.bf16.mxu0 %v1575_v42  ;;  %1460 = vmatprep.subr.bf16.mxu1 %v1575_v42 }
 0x1b4   : > { %1436 = vmatpush3.bf16.msra.mxu0 %v1575_v42  ;;  %1468 = vmatpush3.bf16.msra.mxu1 %v1575_v42 }
 0x269   : > { %v1407_v44 = vpop.f32.mrb[0].mxu1 }
 0x26a   : > { %v738_v46 = vadd.f32 %v1407_v44, %v2217_v43  ;;  %v729_v47 = vpop.f32.mrb[1].mxu1 }
 0x26b   : > { %v730_v45 = vadd.f32 %v2217_v43, %v729_v47  ;;  %v1408_v48 = vpop.f32.mrb[2].mxu1 }
 0x26c   : > { %v794_v49 = vmul.f32 0.5, %v738_v46  ;;  %v741_v50 = vadd.f32 %v1408_v48, %v2217_v43  ;;  %v732_v51 = vpop.f32.mrb[3].mxu1 }
 0x26d   : > { %v792_v52 = vmul.f32 0.5, %v730_v45  ;;  %v733_v53 = vadd.f32 %v2217_v43, %v732_v51 }
 0x26e   : > { %1608 = vtanh.f32 %v794_v49  ;;  %v795_v54 = vmul.f32 0.5, %v741_v50 }
 0x26f   : > { %1610 = vtanh.f32 %v792_v52  ;;  %v793_v56 = vmul.f32 0.5, %v733_v53 }
 0x270   : > { %1612 = vtanh.f32 %v795_v54 }
 0x271   : > { %1614 = vtanh.f32 %v793_v56  ;;  %v1411_v58 = vpop.f32.mrb[4].mxu1 }
 0x272   : > { %v2224_v59 = vadd.f32 %v1411_v58, %v2217_v43  ;;  %v745_v61 = vpop.f32.mrb[5].mxu1 }
 0x273   : > { %v2227_v62 = vadd.f32 %v2217_v43, %v745_v61  ;;  %v1412_v0 = vpop.f32.mrb[6].mxu1 }
 0x274   : > { %v798_v1 = vmul.f32 0.5, %v2224_v59  ;;  %v2231_v2 = vadd.f32 %v1412_v0, %v2217_v43  ;;  %v748_v3 = vpop.f32.mrb[7].mxu1 }
 0x275   : > { %v796_v41 = vmul.f32 0.5, %v2227_v62  ;;  %v2235_v4 = vadd.f32 %v2217_v43, %v748_v3 }
 0x276   : > { %1616 = vtanh.f32 %v798_v1  ;;  %v799_v5 = vmul.f32 0.5, %v2231_v2 }
 0x277   : > { %1618 = vtanh.f32 %v796_v41  ;;  %v797_v6 = vmul.f32 0.5, %v2235_v4 }
 0x278   : > { %v1609_v8 = vpop.eup %1608  ;;  %1620 = vtanh.f32 %v799_v5 }
 0x279   : > { %v1611_v40 = vpop.eup %1610  ;;  %v826_v9 = vmul.f32 0.5, %v1609_v8  ;;  %1622 = vtanh.f32 %v797_v6  ;;  %v1415_v55 = vpop.f32.mrb[8].mxu1 }
 0x27a   : > { %v1613_v10 = vpop.eup %1612  ;;  %v824_v60 = vmul.f32 0.5, %v1611_v40  ;;  %v2240_v11 = vadd.f32 %v1415_v55, %v2217_v43  ;;  %v761_v12 = vpop.f32.mrb[9].mxu1 }
 0x27b   : > { %v1615_v57 = vpop.eup %1614  ;;  %v842_v63 = vadd.f32 0.5, %v826_v9  ;;  %v827_v14 = vmul.f32 0.5, %v1613_v10  ;;  %v2243_v15 = vadd.f32 %v2217_v43, %v761_v12  ;;  %v1416_v17 = vpop.f32.mrb[10].mxu1 }
 0x27c   : > { %v840_v18 = vadd.f32 0.5, %v824_v60  ;;  %v825_v19 = vmul.f32 0.5, %v1615_v57  ;;  %v802_v20 = vmul.f32 0.5, %v2240_v11  ;;  %v2247_v21 = vadd.f32 %v1416_v17, %v2217_v43  ;;  %v764_v23 = vpop.f32.mrb[11].mxu1 }
 0x27d   : > { %v843_v24 = vadd.f32 0.5, %v827_v14  ;;  %v800_v25 = vmul.f32 0.5, %v2243_v15  ;;  %v2251_v26 = vadd.f32 %v2217_v43, %v764_v23  ;;  %v858_v29 = vmul.f32 %v842_v63, %v738_v46 }
 0x27e   : > { %v841_v27 = vadd.f32 0.5, %v825_v19  ;;  %1624 = vtanh.f32 %v802_v20  ;;  %v803_v28 = vmul.f32 0.5, %v2247_v21  ;;  %v856_v13 = vmul.f32 %v840_v18, %v730_v45 }
 0x27f   : > { %v859_v7 = vmul.f32 %v843_v24, %v741_v50  ;;  %1626 = vtanh.f32 %v800_v25  ;;  %v801_v16 = vmul.f32 0.5, %v2251_v26 }
 0x280   : > { %v1617_v30 = vpop.eup %1616  ;;  %v857_v31 = vmul.f32 %v841_v27, %v733_v53  ;;  %1628 = vtanh.f32 %v803_v28 }
 0x281   : > { %v1619_v22 = vpop.eup %1618  ;;  %v873_v32 = vpack.c.bf16 %v859_v7, %v858_v29  ;;  %v830_v33 = vmul.f32 0.5, %v1617_v30  ;;  %1630 = vtanh.f32 %v801_v16  ;;  %v1419_v34 = vpop.f32.mrb[12].mxu1 }
 0x282   : > { %v1621_v35 = vpop.eup %1620  ;;  %v828_v36 = vmul.f32 0.5, %v1619_v22  ;;  %v2256_v37 = vadd.f32 %v1419_v34, %v2217_v43  ;;  %v777_v38 = vpop.f32.mrb[13].mxu1  ;;  %v872_v39 = vpack.c.bf16 %v857_v31, %v856_v13  ;;  %v2274_v34 = vld [vmem:[%s2401_s6] ss:$0 sm:$0xff] }
 0x283   : > { %v1623_v42 = vpop.eup %1622  ;;  %v846_v44 = vadd.f32 0.5, %v830_v33  ;;  %v831_v46 = vmul.f32 0.5, %v1621_v35  ;;  %v778_v47 = vadd.f32 %v2217_v43, %v777_v38  ;;  %v1420_v45 = vpop.f32.mrb[14].mxu1 }
 0x284   : > { %v844_v48 = vadd.f32 0.5, %v828_v36  ;;  %v829_v49 = vmul.f32 0.5, %v1623_v42  ;;  %v806_v50 = vmul.f32 0.5, %v2256_v37  ;;  %v789_v51 = vadd.f32 %v1420_v45, %v2217_v43  ;;  %v780_v52 = vpop.f32.mrb[15].mxu1  ;;  %1437 = vmatprep.mubr.bf16.mxu0 %v872_v39 }
 0x285   : > { %v847_v53 = vadd.f32 0.5, %v831_v46  ;;  %v804_v54 = vmul.f32 0.5, %v778_v47  ;;  %v781_v56 = vadd.f32 %v2217_v43, %v780_v52  ;;  %1438 = vmatmul.mubr.bf16.vlgmr.msra.gmra.mrb[16].mxu0 %v873_v32  ;;  %v862_v0 = vmul.f32 %v846_v44, %v2224_v59 }
 0x286   : > { %v845_v58 = vadd.f32 0.5, %v829_v49  ;;  %1632 = vtanh.f32 %v806_v50  ;;  %v807_v61 = vmul.f32 0.5, %v789_v51  ;;  %v860_v5 = vmul.f32 %v844_v48, %v2227_v62 }
 0x287   : > { %v863_v1 = vmul.f32 %v847_v53, %v2231_v2  ;;  %1634 = vtanh.f32 %v804_v54  ;;  %v805_v3 = vmul.f32 0.5, %v781_v56 }
 0x288   : > { %v1625_v41 = vpop.eup %1624  ;;  %v861_v6 = vmul.f32 %v845_v58, %v2235_v4  ;;  %1636 = vtanh.f32 %v807_v61 }
 0x289   : > { %v1627_v8 = vpop.eup %1626  ;;  %v834_v40 = vmul.f32 0.5, %v1625_v41  ;;  %1638 = vtanh.f32 %v805_v3  ;;  %v875_v43 = vpack.c.bf16 %v863_v1, %v862_v0 }
 0x28a   : > { %v1629_v9 = vpop.eup %1628  ;;  %v832_v55 = vmul.f32 0.5, %v1627_v8  ;;  %v874_v10 = vpack.c.bf16 %v861_v6, %v860_v5 }
 0x28b   : > { %v1631_v60 = vpop.eup %1630  ;;  %v850_v12 = vadd.f32 0.5, %v834_v40  ;;  %v835_v59 = vmul.f32 0.5, %v1629_v9 }
 0x28c   : > { %v848_v57 = vadd.f32 0.5, %v832_v55  ;;  %v833_v2 = vmul.f32 0.5, %v1631_v60  ;;  %1441 = vmatprep.mubr.bf16.mxu0 %v874_v10 }
 0x28d   : > { %v851_v63 = vadd.f32 0.5, %v835_v59  ;;  %1442 = vmatmul.mubr.bf16.gmra.mrb[20].mxu0 %v875_v43  ;;  %v866_v62 = vmul.f32 %v850_v12, %v2240_v11 }
 0x28e   : > { %v849_v14 = vadd.f32 0.5, %v833_v2  ;;  %v864_v18 = vmul.f32 %v848_v57, %v2243_v15 }
 0x28f   : > { %v867_v4 = vmul.f32 %v851_v63, %v2247_v21 }
 0x290   : > { %v1633_v17 = vpop.eup %1632  ;;  %v865_v19 = vmul.f32 %v849_v14, %v2251_v26 }
 0x291   : > { %v1635_v20 = vpop.eup %1634  ;;  %v877_v23 = vpack.c.bf16 %v867_v4, %v866_v62  ;;  %v838_v24 = vmul.f32 0.5, %v1633_v17 }
 0x292   : > { %v1637_v25 = vpop.eup %1636  ;;  %v836_v27 = vmul.f32 0.5, %v1635_v20  ;;  %v876_v28 = vpack.c.bf16 %v865_v19, %v864_v18 }
 0x293   : > { %v1639_v29 = vpop.eup %1638  ;;  %v854_v7 = vadd.f32 0.5, %v838_v24  ;;  %v839_v16 = vmul.f32 0.5, %v1637_v25 }
 0x294   : > { %v852_v30 = vadd.f32 0.5, %v836_v27  ;;  %v837_v13 = vmul.f32 0.5, %v1639_v29  ;;  %1445 = vmatprep.mubr.bf16.mxu1 %v876_v28 }
 0x295   : > { %v855_v11 = vadd.f32 0.5, %v839_v16  ;;  %1446 = vmatmul.mubr.bf16.vlgmr.msra.gmra.mrb[16].mxu1 %v877_v23  ;;  %v870_v31 = vmul.f32 %v854_v7, %v2256_v37 }
 0x296   : > { %v853_v21 = vadd.f32 0.5, %v837_v13  ;;  %v868_v22 = vmul.f32 %v852_v30, %v778_v47 }
 0x297   : > { %v871_v15 = vmul.f32 %v855_v11, %v789_v51 }
 0x298   : > { %v869_v26 = vmul.f32 %v853_v21, %v781_v56 }
 0x299   : > { %v879_v32 = vpack.c.bf16 %v871_v15, %v870_v31 }
 0x29a   : > { %v878_v33 = vpack.c.bf16 %v869_v26, %v868_v22 }
 0x29c   : > { %1449 = vmatprep.mubr.bf16.mxu1 %v878_v33 }
 0x29d   : > { %1450 = vmatmul.mubr.bf16.gmra.mrb[20].mxu1 %v879_v32 }
 0x358   : > { %v1439_v35 = vpop.f32.mrb[16].mxu0 }
 0x359   : > { %v994_v36 = vadd.f32 %v1439_v35, %v2274_v34  ;;  %v985_v38 = vpop.f32.mrb[17].mxu0 }
 0x35a   : > { %v986_v39 = vadd.f32 %v2274_v34, %v985_v38  ;;  %v1440_v42 = vpop.f32.mrb[18].mxu0 }
 0x35b   : > { %v1050_v37 = vmul.f32 0.5, %v994_v36  ;;  %v997_v44 = vadd.f32 %v1440_v42, %v2274_v34  ;;  %v988_v46 = vpop.f32.mrb[19].mxu0 }
 0x35c   : > { %v1048_v47 = vmul.f32 0.5, %v986_v39  ;;  %v989_v45 = vadd.f32 %v2274_v34, %v988_v46 }
 0x35d   : > { %1640 = vtanh.f32 %v1050_v37  ;;  %v1051_v48 = vmul.f32 0.5, %v997_v44 }
 0x35e   : > { %1642 = vtanh.f32 %v1048_v47  ;;  %v1049_v49 = vmul.f32 0.5, %v989_v45 }
 0x35f   : > { %1644 = vtanh.f32 %v1051_v48 }
 0x360   : > { %1646 = vtanh.f32 %v1049_v49  ;;  %v1443_v50 = vpop.f32.mrb[20].mxu0 }
 0x361   : > { %v2281_v51 = vadd.f32 %v1443_v50, %v2274_v34  ;;  %v1001_v52 = vpop.f32.mrb[21].mxu0 }
 0x362   : > { %v2284_v53 = vadd.f32 %v2274_v34, %v1001_v52  ;;  %v1444_v54 = vpop.f32.mrb[22].mxu0 }
 0x363   : > { %v1054_v56 = vmul.f32 0.5, %v2281_v51  ;;  %v2288_v58 = vadd.f32 %v1444_v54, %v2274_v34  ;;  %v1004_v61 = vpop.f32.mrb[23].mxu0 }
 0x364   : > { %v1052_v0 = vmul.f32 0.5, %v2284_v53  ;;  %v2292_v1 = vadd.f32 %v2274_v34, %v1004_v61 }
 0x365   : > { %1648 = vtanh.f32 %v1054_v56  ;;  %v1055_v3 = vmul.f32 0.5, %v2288_v58 }
 0x366   : > { %1650 = vtanh.f32 %v1052_v0  ;;  %v1053_v41 = vmul.f32 0.5, %v2292_v1 }
 0x367   : > { %v1641_v5 = vpop.eup %1640  ;;  %1652 = vtanh.f32 %v1055_v3 }
 0x368   : > { %v1643_v6 = vpop.eup %1642  ;;  %v1082_v8 = vmul.f32 0.5, %v1641_v5  ;;  %1654 = vtanh.f32 %v1053_v41  ;;  %v1447_v40 = vpop.f32.mrb[16].mxu1 }
 0x369   : > { %v1645_v43 = vpop.eup %1644  ;;  %v1080_v9 = vmul.f32 0.5, %v1643_v6  ;;  %v2297_v55 = vadd.f32 %v1447_v40, %v2274_v34  ;;  %v1017_v10 = vpop.f32.mrb[17].mxu1 }
 0x36a   : > { %v1647_v60 = vpop.eup %1646  ;;  %v1098_v12 = vadd.f32 0.5, %v1082_v8  ;;  %v1083_v59 = vmul.f32 0.5, %v1645_v43  ;;  %v2300_v57 = vadd.f32 %v2274_v34, %v1017_v10  ;;  %v1448_v2 = vpop.f32.mrb[18].mxu1 }
 0x36b   : > { %v1096_v63 = vadd.f32 0.5, %v1080_v9  ;;  %v1081_v14 = vmul.f32 0.5, %v1647_v60  ;;  %v1058_v62 = vmul.f32 0.5, %v2297_v55  ;;  %v2304_v4 = vadd.f32 %v1448_v2, %v2274_v34  ;;  %v1020_v17 = vpop.f32.mrb[19].mxu1 }
 0x36c   : > { %v1114_v18 = vmul.f32 %v1098_v12, %v994_v36  ;;  %v1099_v19 = vadd.f32 0.5, %v1083_v59  ;;  %v1056_v20 = vmul.f32 0.5, %v2300_v57  ;;  %v2308_v23 = vadd.f32 %v2274_v34, %v1020_v17 }
 0x36d   : > { %v1112_v24 = vmul.f32 %v1096_v63, %v986_v39  ;;  %v1097_v25 = vadd.f32 0.5, %v1081_v14  ;;  %1656 = vtanh.f32 %v1058_v62  ;;  %v1059_v27 = vmul.f32 0.5, %v2304_v4 }
 0x36e   : > { %1130 = vst [vmem:[%s2313_s15 + $0x10] sm:$0xff] %v1114_v18  ;;  %v1115_v28 = vmul.f32 %v1099_v19, %v997_v44  ;;  %1658 = vtanh.f32 %v1056_v20  ;;  %v1057_v29 = vmul.f32 0.5, %v2308_v23 }
 0x36f   : > { %v1649_v7 = vpop.eup %1648  ;;  %1128 = vst [vmem:[%s2313_s15] sm:$0xff] %v1112_v24  ;;  %v1113_v16 = vmul.f32 %v1097_v25, %v989_v45  ;;  %1660 = vtanh.f32 %v1059_v27 }
 0x370   : > { %v1651_v30 = vpop.eup %1650  ;;  %1131 = vst [vmem:[%s2313_s15 + $0x18] sm:$0xff] %v1115_v28  ;;  %v1086_v13 = vmul.f32 0.5, %v1649_v7  ;;  %1662 = vtanh.f32 %v1057_v29  ;;  %v1451_v11 = vpop.f32.mrb[20].mxu1 }
 0x371   : > { %v1653_v21 = vpop.eup %1652  ;;  %1129 = vst [vmem:[%s2313_s15 + $0x8] sm:$0xff] %v1113_v16  ;;  %v1084_v31 = vmul.f32 0.5, %v1651_v30  ;;  %v1042_v15 = vadd.f32 %v1451_v11, %v2274_v34  ;;  %v1033_v22 = vpop.f32.mrb[21].mxu1 }
 0x372   : > { %v1655_v26 = vpop.eup %1654  ;;  %v1102_v32 = vadd.f32 0.5, %v1086_v13  ;;  %v1087_v33 = vmul.f32 0.5, %v1653_v21  ;;  %v1034_v35 = vadd.f32 %v2274_v34, %v1033_v22  ;;  %v1452_v36 = vpop.f32.mrb[22].mxu1 }
 0x373   : > { %v1100_v38 = vadd.f32 0.5, %v1084_v31  ;;  %v1085_v39 = vmul.f32 0.5, %v1655_v26  ;;  %v1062_v42 = vmul.f32 0.5, %v1042_v15  ;;  %v1045_v37 = vadd.f32 %v1452_v36, %v2274_v34  ;;  %v1036_v44 = vpop.f32.mrb[23].mxu1 }
 0x374   : > { %v1118_v46 = vmul.f32 %v1102_v32, %v2281_v51  ;;  %v1103_v47 = vadd.f32 0.5, %v1087_v33  ;;  %v1060_v45 = vmul.f32 0.5, %v1034_v35  ;;  %v1037_v48 = vadd.f32 %v2274_v34, %v1036_v44 }
 0x375   : > { %v1116_v49 = vmul.f32 %v1100_v38, %v2284_v53  ;;  %v1101_v50 = vadd.f32 0.5, %v1085_v39  ;;  %1664 = vtanh.f32 %v1062_v42  ;;  %v1063_v52 = vmul.f32 0.5, %v1045_v37 }
 0x376   : > { %1134 = vst [vmem:[%s2313_s15 + $0x30] sm:$0xff] %v1118_v46  ;;  %v1119_v54 = vmul.f32 %v1103_v47, %v2288_v58  ;;  %1666 = vtanh.f32 %v1060_v45  ;;  %v1061_v56 = vmul.f32 0.5, %v1037_v48 }
 0x377   : > { %v1657_v61 = vpop.eup %1656  ;;  %1132 = vst [vmem:[%s2313_s15 + $0x20] sm:$0xff] %v1116_v49  ;;  %v1117_v51 = vmul.f32 %v1101_v50, %v2292_v1  ;;  %1668 = vtanh.f32 %v1063_v52 }
 0x378   : > { %v1659_v0 = vpop.eup %1658  ;;  %1135 = vst [vmem:[%s2313_s15 + $0x38] sm:$0xff] %v1119_v54  ;;  %v1090_v34 = vmul.f32 0.5, %v1657_v61  ;;  %1670 = vtanh.f32 %v1061_v56 }
 0x379   : > { %v1661_v53 = vpop.eup %1660  ;;  %1133 = vst [vmem:[%s2313_s15 + $0x28] sm:$0xff] %v1117_v51  ;;  %v1088_v3 = vmul.f32 0.5, %v1659_v0 }
 0x37a   : > { %v1663_v41 = vpop.eup %1662  ;;  %v1106_v5 = vadd.f32 0.5, %v1090_v34  ;;  %v1091_v58 = vmul.f32 0.5, %v1661_v53 }
 0x37b   : > { %v1104_v6 = vadd.f32 0.5, %v1088_v3  ;;  %v1089_v8 = vmul.f32 0.5, %v1663_v41 }
 0x37c   : > { %v1122_v40 = vmul.f32 %v1106_v5, %v2297_v55  ;;  %v1107_v1 = vadd.f32 0.5, %v1091_v58 }
 0x37d   : > { %v1120_v43 = vmul.f32 %v1104_v6, %v2300_v57  ;;  %v1105_v9 = vadd.f32 0.5, %v1089_v8 }
 0x37e   : > { %1138 = vst [vmem:[%s2313_s15 + $0x50] sm:$0xff] %v1122_v40  ;;  %v1123_v10 = vmul.f32 %v1107_v1, %v2304_v4 }
 0x37f   : > { %v1665_v60 = vpop.eup %1664  ;;  %1136 = vst [vmem:[%s2313_s15 + $0x40] sm:$0xff] %v1120_v43  ;;  %v1121_v12 = vmul.f32 %v1105_v9, %v2308_v23 }
 0x380   : > { %v1667_v59 = vpop.eup %1666  ;;  %1139 = vst [vmem:[%s2313_s15 + $0x58] sm:$0xff] %v1123_v10  ;;  %v1094_v2 = vmul.f32 0.5, %v1665_v60 }
 0x381   : > { %v1669_v63 = vpop.eup %1668  ;;  %1137 = vst [vmem:[%s2313_s15 + $0x48] sm:$0xff] %v1121_v12  ;;  %v1092_v55 = vmul.f32 0.5, %v1667_v59 }
 0x382   : > { %v1671_v14 = vpop.eup %1670  ;;  %v1110_v57 = vadd.f32 0.5, %v1094_v2  ;;  %v1095_v62 = vmul.f32 0.5, %v1669_v63 }
 0x383   : > { %v1108_v17 = vadd.f32 0.5, %v1092_v55  ;;  %v1093_v4 = vmul.f32 0.5, %v1671_v14 }
 0x384   : > { %v1126_v18 = vmul.f32 %v1110_v57, %v1042_v15  ;;  %v1111_v19 = vadd.f32 0.5, %v1095_v62 }
 0x385   : > { %v1124_v20 = vmul.f32 %v1108_v17, %v1034_v35  ;;  %v1109_v23 = vadd.f32 0.5, %v1093_v4 }
 0x386   : > { %1142 = vst [vmem:[%s2313_s15 + $0x70] sm:$0xff] %v1126_v18  ;;  %v1127_v24 = vmul.f32 %v1111_v19, %v1045_v37 }
 0x387   : > { %1140 = vst [vmem:[%s2313_s15 + $0x60] sm:$0xff] %v1124_v20  ;;  %v1125_v25 = vmul.f32 %v1109_v23, %v1037_v48 }
 0x388   : > { %1143 = vst [vmem:[%s2313_s15 + $0x78] sm:$0xff] %v1127_v24 }
 0x389   : > { %1141 = vst [vmem:[%s2313_s15 + $0x68] sm:$0xff] %v1125_v25 }
 0x38a   : > { %1799 = shalt.err (!%p1796_p4)
}
 0x38b   : > { %s1800_s23 = scalar_lea.hbm %s2346_s16, 2048  ;;  %s1804_s14 = scalar_lea.hbm %s2402_s7, 4096 }
 0x38c   : > { %p1801_p9 = scmp.ne.s32.totalorder %s2346_s16, %s1800_s23  ;;  %p1805_p8 = scmp.lt.u32.totalorder %s2346_s16, %s2402_s7 }
 0x38d   : > { %p1806_p13 = scmp.lt.u32.totalorder %s1804_s14, %s1800_s23  ;;  %p1808_p10 = scmp.lt.u32.totalorder %s1800_s23, %s2346_s16 }
 0x38e   : > { %p1802_p0 = pnand %p1801_p9, %p2067_p5 }
 0x38f   : > { %p1807_p6 = por %p1806_p13, %p1805_p8 }
 0x390   : > { %p1803_p11 = pneg %p1802_p0 }
 0x391   : > { %p1809_p3 = por %p1808_p10, %p1807_p6 }
 0x393   : > { %p1810_p7 = pnand %p1809_p3, %p1803_p11 }
 0x395   : > { %1813 = shalt.err (!%p1810_p7)
}
 0x396   : > { %s1871_s8 = smov 128   ;;  %s1872_s17 = smov 8  }
 0x397   : > { %1483 = dma.vmem_to_hbm [thread:$0]  (%p2067_p5), %s2348_s12, 2048, %s2346_s16, %s1145_s28, %s1871_s8, %s1871_s8, %s1872_s17  }
 0x398 PF: > { %s2422_s13 = sld [smem:[#allocation15_spill]]  ;;  %s1173_s20 = sand.u32 1, %s1848_s24  }
 0x399   : > { %p2424_p1 = scmp.ge.s32.totalorder %s1860_s27, 2  ;;  %s1174_s30 = scalar_lea.sflag [#allocation4], %s1173_s20 }
 0x39e   : > { %p2423_p12 = scmp.ne.s32.totalorder %s2422_s13, 0 }
 0x3a0   : > { %p1500_p2 = pnand %p2424_p1, %p2423_p12 }
 0x3a2   : > { %1843 = dma.done.wait (!%p1500_p2), %s1174_s30, 2048  }
 0x3a3   : > { %1845 = vsyncadd (!%p1500_p2), %s1174_s30, 4294965248  ;;  %p22_p4 = scmp.ge.s32.totalorder %s2053_s22, 4   ;;  %s2425_s24 = smov %s1852_s25 }
 0x3a4   : > { %s2426_s25 = smov %s1856_s26  ;;  %s2427_s26 = smov %s2063_s18 }
 0x3a5   : > { %s2428_s27 = smov %s2053_s22  ;;  %24 = sbr.rel (!%p22_p4) target bundleno = 7 (0x7), region = 105 }
 0x3ac   :  { %1179 = vsyncpa [#allocation3], 1 }
 0x3ad   :  { %1181 = vsyncpa [#allocation3 + $0x1], 1 }
 0x3ae   :  { %1182 = vsyncpa [#allocation6], 1 }
 0x3af   :  { %1183 = vsyncpa [#allocation9], 1 }
 0x3b0   :  { %1184 = vsyncpa [#allocation4], 1 }
 0x3b1   :  { %1186 = vsyncpa [#allocation4 + $0x1], 1 }

</bundles_post_ra>
